<compile_context>
chip_gen: v7x
topology: tpu7x:2x2x1
jax: 0.10.0
libtpu: 0.0.40
codegen_flags: <defaults>
</compile_context>

<pallas_src>
import jax
import jax.numpy as jnp
from jax.experimental import pallas as pl
from jax.experimental.pallas import tpu as pltpu


# ---------------------------------------------------------------------------
# Kernel
# ---------------------------------------------------------------------------
def _embedding_kernel(idx_ref, table_ref, out_ref):
    # idx_ref:   (R, P)            int32 token ids, P tokens packed per output row
    # table_ref: (P*V_pad, P*D)    block-diagonal table, vocab zero-padded to V_pad
    # out_ref:   (R, P*D)          gathered embeddings, lane-dense
    ids = idx_ref[...]
    table = table_ref[...]
    rows, pack = ids.shape
    v_pad = table.shape[0] // pack

    # Band-sliced one-hot: one compare (+ cast) per band over an aligned
    # (rows, V_pad) slice; bands concat along the 128-aligned lane axis.
    col = jax.lax.broadcasted_iota(jnp.int32, (rows, v_pad), 1)
    bands = [(col == ids[:, j:j + 1]).astype(table.dtype) for j in range(pack)]
    one_hot = bands[0] if pack == 1 else jnp.concatenate(bands, axis=1)

    # one_hot @ block_diag(table) == per-band row gather; result is lane-dense.
    # (f32 in / f32 acc; exact vs the f32 reference since one-hot entries are 0/1.)
    out_ref[...] = jnp.dot(
        one_hot, table, preferred_element_type=jnp.float32
    ).astype(out_ref.dtype)


# ---------------------------------------------------------------------------
# Host-side helpers
# ---------------------------------------------------------------------------
def _round_up(x, m):
    return -(-x // m) * m


def _hw_params():
    """Per-generation knobs (conservative defaults if the device is unknown)."""
    try:
        kind = jax.devices()[0].device_kind.lower()
    except Exception:  # pragma: no cover
        kind = ""
    if "v7" in kind:   # 64 MiB VMEM per TC, 2 TensorCores/chip, 256-wide MXU
        return {"vmem_budget": 48 << 20, "multi_core": True, "lane_target": 256}
    if "v6" in kind:   # 128 MiB VMEM, single TC, 256-wide MXU
        return {"vmem_budget": 100 << 20, "multi_core": False, "lane_target": 256}
    if "v5" in kind:   # 128 MiB VMEM, single TC, 128-wide MXU
        return {"vmem_budget": 100 << 20, "multi_core": False, "lane_target": 128}
    return {"vmem_budget": 32 << 20, "multi_core": False, "lane_target": 128}


def _choose_pack(d, lane_target):
    """Tokens packed per output row so rows are >= lane_target lanes wide."""
    for lanes in (lane_target, 128):
        if d < lanes and lanes % d == 0:
            return lanes // d
    return 1  # D >= 128 (or awkward D): no packing; stores may be masked if D<128


def prepare_frozen_embedding(charmat, *, lane_target=None):
    """One-time (init) prep of the frozen embedding table: pad vocab to a
    multiple of 128 and expand to the packed block-diagonal table.  Call ONCE at
    model init; do NOT rebuild per forward call (the table is a frozen weight)."""
    hw = _hw_params()
    if lane_target is None:
        lane_target = hw["lane_target"]
    vocab, dim = charmat.shape
    pack = _choose_pack(dim, lane_target)
    v_pad = _round_up(vocab, 128)

    # Shrink the packing factor if the block-diag table would crowd VMEM.
    while pack > 1 and (pack * v_pad) * (pack * dim) * 4 > hw["vmem_budget"] // 4:
        pack //= 2

    tp = jnp.pad(charmat, ((0, v_pad - vocab), (0, 0)))   # zero rows never selected
    if pack == 1:
        table = tp
    else:
        blocks = [jnp.pad(tp, ((0, 0), (j * dim, (pack - 1 - j) * dim)))
                  for j in range(pack)]
        table = jnp.concatenate(blocks, axis=0)            # (pack*V_pad, pack*D)

    if table.size * 4 > hw["vmem_budget"] // 2:
        # TODO(synk): word-embedding-scale vocab needs a scalar-prefetch DMA gather.
        raise NotImplementedError(
            "embedding table too large for the VMEM-resident one-hot gather")

    return {"table": table, "pack": pack, "v_pad": v_pad,
            "dim": dim, "vocab": vocab, "hw": hw}


def _max_tile_rows(hw, pack, v_pad, dim, table_bytes):
    """Largest tile row count whose VMEM footprint fits the per-generation budget.

    Accounting: resident table (counted x2, the conservative fallback case),
    lane-PADDED int32 idx block (x2 buffers), output block (x2 buffers), and the
    in-kernel iota / band-compare / f32 one-hot intermediates (~3x)."""
    fixed = 2 * table_bytes + (2 << 20)                   # + compiler scratch slack
    per_row = (2 * 128 * 4                                # idx block (lane-padded)
               + 2 * pack * dim * 4                       # output block
               + 3 * pack * v_pad * 4)                    # one-hot / iota intermediates
    avail = hw["vmem_budget"] - fixed
    if avail <= per_row * 8:
        return 8
    return max(8, (avail // per_row) // 8 * 8)


def _divisors(n):
    out, i = [], 1
    while i * i <= n:
        if n % i == 0:
            out.append(i)
            if i != n // i:
                out.append(n // i)
        i += 1
    return out


def _choose_tiling(n_tokens, pack, max_rows, multi_core):
    """Pick (tile_rows, total_rows).  Prefers tiles that divide the row count
    (no padding, no post-kernel slice); the >=2-step rule only on v7x megacore."""
    n_rows = -(-n_tokens // pack)
    hi = max(8, min(max_rows, _round_up(n_rows, 8)))
    if n_tokens % pack == 0:
        divs = [d for d in _divisors(n_rows) if d % 8 == 0 and d <= hi]
        if divs:
            if multi_core:
                multi = [d for d in divs if n_rows // d >= 2]
                return (max(multi) if multi else max(divs)), n_rows
            return max(divs), n_rows
    # Padding path (awkward token count): pad rows up to a tile multiple.
    tile = hi
    if multi_core and n_rows > 8:
        tile = min(tile, max(8, _round_up(-(-n_rows // 2), 8)))
    return tile, _round_up(n_rows, tile)


def char_embedding(prepared, x, *, out_dtype=None):
    """Pallas equivalent of the frozen nn.Embedding row gather.

    prepared: output of prepare_frozen_embedding (built once at init)
    x:        integer array, any shape, values expected in [0, vocab)
    returns:  x.shape + (D,)
    """
    table = prepared["table"]
    pack = prepared["pack"]
    v_pad = prepared["v_pad"]
    dim = prepared["dim"]
    hw = prepared["hw"]
    if out_dtype is None:
        out_dtype = table.dtype   # f32 for bit-compat; bf16 halves writeback if OK

    orig_shape = x.shape
    idx = x.reshape(-1).astype(jnp.int32)
    n = int(idx.shape[0])

    table_bytes = int(table.size) * table.dtype.itemsize
    max_rows = _max_tile_rows(hw, pack, v_pad, dim, table_bytes)
    tile_rows, total_rows = _choose_tiling(n, pack, max_rows, hw["multi_core"])

    n_pad = total_rows * pack
    if n_pad != n:
        idx = jnp.pad(idx, (0, n_pad - n))       # padded ids -> rows sliced off below
    idx2 = idx.reshape(total_rows, pack)

    def build_call(single_buffer_table):
        table_kwargs = (
            {"pipeline_mode": pl.Buffered(1)} if single_buffer_table else {})
        return pl.pallas_call(
            _embedding_kernel,
            out_shape=jax.ShapeDtypeStruct((total_rows, pack * dim), out_dtype),
            grid_spec=pltpu.PrefetchScalarGridSpec(
                num_scalar_prefetch=0,
                grid=(total_rows // tile_rows,),
                in_specs=[
                    # per-step (tile_rows, pack) index block (only per-step input DMA)
                    pl.BlockSpec((tile_rows, pack), lambda i: (i, 0)),
                    # full block-diag table: constant index_map -> fetched once,
                    # VMEM-resident across all steps; single-buffered.
                    pl.BlockSpec((pack * v_pad, pack * dim), lambda i: (0, 0),
                                 **table_kwargs),
                ],
                out_specs=pl.BlockSpec((tile_rows, pack * dim), lambda i: (i, 0)),
            ),
            compiler_params=pltpu.CompilerParams(
                dimension_semantics=("parallel",),
                vmem_limit_bytes=hw["vmem_budget"],
            ),
        )

    try:
        out = build_call(True)(idx2, table)
    except Exception:
        # pl.Buffered(1) not accepted by this jax version -> default buffering.
        out = build_call(False)(idx2, table)

    out = out.reshape(n_pad, dim)                # layout view: (rows, P*D) -> (n_pad, D)
    if n_pad != n:
        out = out[:n]
    return out.reshape(orig_shape + (dim,))


if __name__ == "__main__":
    key = jax.random.PRNGKey(0)
    k_mat, k_idx = jax.random.split(key)

    # Deterministic "pretrained" char embedding matrix (charmat): (vocab, dim)
    VOCAB, DIM = 96, 64
    charmat = jax.random.normal(k_mat, (VOCAB, DIM), dtype=jnp.float32)

    # Character indices: (batch=2, seq=8, word_len=16) -> 256 tokens
    x = jax.random.randint(k_idx, (2, 8, 16), 0, VOCAB, dtype=jnp.int32)

    prepared = prepare_frozen_embedding(charmat)   # hoisted: built once at init
    out = char_embedding(prepared, x)
    out = jax.block_until_ready(out)

    # Reference check: plain JAX gather (same semantics as nn.Embedding)
    ref = charmat[x]
    assert out.shape == x.shape + (DIM,)
    assert jnp.allclose(out, ref, atol=1e-5, rtol=1e-5)

    print("KERNEL_OK")
</pallas_src>

<mosaic_0001>
module attributes {stable_mosaic.version = 11 : i64} {
  func.func @_embedding_kernel(%arg0: i32, %arg1: memref<128x2xi32, #tpu.memory_space<vmem>>, %arg2: memref<256x128xf32, #tpu.memory_space<vmem>>, %arg3: memref<128x128xf32, #tpu.memory_space<vmem>>) attributes {dimension_semantics = [#tpu.dimension_semantics<parallel>], iteration_bounds = array<i64: 1>, scalar_prefetch = 0 : i64, scratch_operands = 0 : i64, tpu.core_type = #tpu.core_type<tc>, window_params = [{transform_indices = @transform_0, window_bounds = array<i64: 128, 2>}, {pipeline_mode = #tpu.pipeline_mode<synchronous>, transform_indices = @transform_1, window_bounds = array<i64: 256, 128>}, {transform_indices = @transform_2, window_bounds = array<i64: 128, 128>}]} {
    %c0 = arith.constant 0 : index
    %c0_0 = arith.constant 0 : index
    %0 = vector.load %arg1[%c0, %c0_0] : memref<128x2xi32, #tpu.memory_space<vmem>>, vector<128x2xi32>
    %c0_1 = arith.constant 0 : index
    %c0_2 = arith.constant 0 : index
    %1 = vector.load %arg2[%c0_1, %c0_2] : memref<256x128xf32, #tpu.memory_space<vmem>>, vector<256x128xf32>
    %2 = tpu.iota {dimensions = array<i32: 1>} : vector<128x128xi32>
    %3 = vector.extract_strided_slice %0 {offsets = [0, 0], sizes = [128, 1], strides = [1, 1]} : vector<128x2xi32> to vector<128x1xi32>
    %4 = vector.broadcast %3 : vector<128x1xi32> to vector<128x128xi32>
    %5 = arith.cmpi eq, %2, %4 : vector<128x128xi32>
    %6 = arith.extui %5 : vector<128x128xi1> to vector<128x128xi32>
    %7 = arith.sitofp %6 : vector<128x128xi32> to vector<128x128xf32>
    %8 = vector.extract_strided_slice %0 {offsets = [0, 1], sizes = [128, 1], strides = [1, 1]} : vector<128x2xi32> to vector<128x1xi32>
    %9 = vector.broadcast %8 : vector<128x1xi32> to vector<128x128xi32>
    %10 = arith.cmpi eq, %2, %9 : vector<128x128xi32>
    %11 = arith.extui %10 : vector<128x128xi1> to vector<128x128xi32>
    %12 = arith.sitofp %11 : vector<128x128xi32> to vector<128x128xf32>
    %13 = tpu.concatenate %7, %12 in 1 : vector<128x128xf32>, vector<128x128xf32> -> vector<128x256xf32>
    %cst = arith.constant dense<0.000000e+00> : vector<128x128xf32>
    %14 = tpu.matmul %13, %1, %cst {dimension_numbers = #tpu.dot_dimension_numbers<[1], [0], [0], [1], [0, 0, 1, 1], [], []>} : vector<128x256xf32>, vector<256x128xf32>, vector<128x128xf32> -> vector<128x128xf32>
    %c0_3 = arith.constant 0 : index
    %c0_4 = arith.constant 0 : index
    %15 = vector.load %arg3[%c0_3, %c0_4] : memref<128x128xf32, #tpu.memory_space<vmem>>, vector<128x128xf32>
    tpu.vector_store %arg3[%c0_3, %c0_4], %14 {strides = array<i32>} : memref<128x128xf32, #tpu.memory_space<vmem>>, vector<128x128xf32>,
    return
  }
  func.func @transform_0(%arg0: i32) -> (i32, i32) {
    %c0_i32 = arith.constant 0 : i32
    %c0_i32_0 = arith.constant 0 : i32
    return %arg0, %c0_i32 : i32, i32
  }
  func.func @transform_1(%arg0: i32) -> (i32, i32) {
    %c0_i32 = arith.constant 0 : i32
    %c0_i32_0 = arith.constant 0 : i32
    %c0_i32_1 = arith.constant 0 : i32
    return %c0_i32, %c0_i32_0 : i32, i32
  }
  func.func @transform_2(%arg0: i32) -> (i32, i32) {
    %c0_i32 = arith.constant 0 : i32
    %c0_i32_0 = arith.constant 0 : i32
    return %arg0, %c0_i32 : i32, i32
  }
}

module attributes {stable_mosaic.version = 11 : i64} {
  func.func @_embedding_kernel(%arg0: i32, %arg1: memref<128x2xi32, #tpu.memory_space<vmem>>, %arg2: memref<256x128xf32, #tpu.memory_space<vmem>>, %arg3: memref<128x128xf32, #tpu.memory_space<vmem>>) attributes {dimension_semantics = [#tpu.dimension_semantics<parallel>], iteration_bounds = array<i64: 1>, scalar_prefetch = 0 : i64, scratch_operands = 0 : i64, tpu.core_type = #tpu.core_type<tc>, window_params = [{transform_indices = @transform_0, window_bounds = array<i64: 128, 2>}, {pipeline_mode = #tpu.pipeline_mode<synchronous>, transform_indices = @transform_1, window_bounds = array<i64: 256, 128>}, {transform_indices = @transform_2, window_bounds = array<i64: 128, 128>}]} {
    %c0 = arith.constant 0 : index
    %c0_0 = arith.constant 0 : index
    %0 = vector.load %arg1[%c0, %c0_0] : memref<128x2xi32, #tpu.memory_space<vmem>>, vector<128x2xi32>
    %c0_1 = arith.constant 0 : index
    %c0_2 = arith.constant 0 : index
    %1 = vector.load %arg2[%c0_1, %c0_2] : memref<256x128xf32, #tpu.memory_space<vmem>>, vector<256x128xf32>
    %2 = tpu.iota {dimensions = array<i32: 1>} : vector<128x128xi32>
    %3 = vector.extract_strided_slice %0 {offsets = [0, 0], sizes = [128, 1], strides = [1, 1]} : vector<128x2xi32> to vector<128x1xi32>
    %4 = vector.broadcast %3 : vector<128x1xi32> to vector<128x128xi32>
    %5 = arith.cmpi eq, %2, %4 : vector<128x128xi32>
    %6 = arith.extui %5 : vector<128x128xi1> to vector<128x128xi32>
    %7 = arith.sitofp %6 : vector<128x128xi32> to vector<128x128xf32>
    %8 = vector.extract_strided_slice %0 {offsets = [0, 1], sizes = [128, 1], strides = [1, 1]} : vector<128x2xi32> to vector<128x1xi32>
    %9 = vector.broadcast %8 : vector<128x1xi32> to vector<128x128xi32>
    %10 = arith.cmpi eq, %2, %9 : vector<128x128xi32>
    %11 = arith.extui %10 : vector<128x128xi1> to vector<128x128xi32>
    %12 = arith.sitofp %11 : vector<128x128xi32> to vector<128x128xf32>
    %13 = tpu.concatenate %7, %12 in 1 : vector<128x128xf32>, vector<128x128xf32> -> vector<128x256xf32>
    %cst = arith.constant dense<0.000000e+00> : vector<128x128xf32>
    %14 = tpu.matmul %13, %1, %cst {dimension_numbers = #tpu.dot_dimension_numbers<[1], [0], [0], [1], [0, 0, 1, 1], [], []>} : vector<128x256xf32>, vector<256x128xf32>, vector<128x128xf32> -> vector<128x128xf32>
    %c0_3 = arith.constant 0 : index
    %c0_4 = arith.constant 0 : index
    %15 = vector.load %arg3[%c0_3, %c0_4] : memref<128x128xf32, #tpu.memory_space<vmem>>, vector<128x128xf32>
    tpu.vector_store %arg3[%c0_3, %c0_4], %14 {strides = array<i32>} : memref<128x128xf32, #tpu.memory_space<vmem>>, vector<128x128xf32>,
    return
  }
  func.func @transform_0(%arg0: i32) -> (i32, i32) {
    %c0_i32 = arith.constant 0 : i32
    %c0_i32_0 = arith.constant 0 : i32
    return %arg0, %c0_i32 : i32, i32
  }
  func.func @transform_1(%arg0: i32) -> (i32, i32) {
    %c0_i32 = arith.constant 0 : i32
    %c0_i32_0 = arith.constant 0 : i32
    %c0_i32_1 = arith.constant 0 : i32
    return %c0_i32, %c0_i32_0 : i32, i32
  }
  func.func @transform_2(%arg0: i32) -> (i32, i32) {
    %c0_i32 = arith.constant 0 : i32
    %c0_i32_0 = arith.constant 0 : i32
    return %arg0, %c0_i32 : i32, i32
  }
}

</mosaic_0001>

<bundles_post_ra>
// kernel: tpu_custom_call.1
= control target key start
LH: loop header
LB: loop body
LE: loop exit
PB: predicated region body
PF: predicated region fallthrough
CT: control target
= control target key end

     0   :  { %7 = vsyncpa [#allocation3], 0  ;;  %s912_s0 = inlined_call_operand.vmem [shape: s32[128,2], index: 0, kind: input, shape index: {}]   ;;  %s913_s1 = inlined_call_operand.hbm [shape: f32[256,128], index: 1, kind: input, shape index: {}]   ;;  %s914_s2 = inlined_call_operand.hbm [shape: f32[128,128], index: 2, kind: output, shape index: {}]  }
   0x1   :  { %8 = vsyncpa [#allocation4], 0  ;;  %s712_s9 = smov [#allocation2]   ;;  %s664_s13 = scalar_lea.hbm %s913_s1, 4096 }
   0x2   :  { %s16_s10 = sshll.u32 %s712_s9, 4  ;;  %p665_p0 = scmp.ne.s32.totalorder %s913_s1, %s664_s13  ;;  %s17_s10 = int_to_ptr.vmem [resolvable:$true] %s16_s10 }
   0x3   :  { %p668_p1 = scmp.lt.u32.totalorder %s664_s13, %s913_s1 }
   0x5   :  { %p670_p2 = pnand %p668_p1, %p665_p0 }
   0x7   :  { %673 = shalt.err (!%p670_p2)
}
   0x8   :  { %s674_s18 = scalar_lea.vmem %s17_s10, 4096  ;;  %p679_p4 = scmp.lt.s32.totalorder %s17_s10, %s17_s10 }
   0x9   :  { %p675_p3 = scmp.ne.s32.totalorder %s17_s10, %s674_s18  ;;  %p680_p5 = scmp.lt.s32.totalorder %s674_s18, %s674_s18 }
   0xb   :  { %p681_p6 = por %p680_p5, %p679_p4 }
   0xd   :  { %p682_p7 = pnand %p681_p6, %p675_p3 }
   0xf   :  { %685 = shalt.err (!%p682_p7)
}
  0x10   :  { %s713_s19 = smov 128   ;;  %s714_s20 = smov 8  }
  0x11   :  { %22 = dma.hbm_to_vmem [thread:$0]  %s913_s1, 4096, %s17_s10, [#allocation3], %s713_s19, %s713_s19, %s714_s20  }
  0x12   :  { %708 = dma.done.wait [#allocation3], 4096  }
  0x13   :  { %709 = vsyncadd [#allocation3], 4294963200  ;;  %v715_v0 = vmov 0   ;;  %v754_v1 = vld [vmem:[%s912_s0 + $0x8] sm:$0xff]  ;;  %v26_v2 = vld [vmem:[%s912_s0] sm:$0xff]  ;;  %v716_v18 = vmov 1  }
  0x14   :  { %647 = vset.pattern.permute.xlu0 %v715_v0  ;;  %645 = vset.pattern.permute.xlu1 %v715_v0  ;;  %v763_v3 = vld [vmem:[%s912_s0 + $0x18] sm:$0xff]  ;;  %v34_v4 = vld [vmem:[%s912_s0 + $0x40] sm:$0xff]  ;;  %v772_v5 = vld [vmem:[%s912_s0 + $0x28] sm:$0xff] }
  0x15   :  { %80 = vperm.xlu0 %647, %v754_v1   ;;  %77 = vperm.xlu1 %645, %v26_v2   ;;  %v58_v6 = vld [vmem:[#allocation2 + $0x80] sm:$0xff]  ;;  %v59_v7 = vld [vmem:[#allocation2 + $0x88] sm:$0xff]  ;;  %v60_v11 = vld [vmem:[#allocation2 + $0x90] sm:$0xff] }
  0x16   :  { %v590_v8 = vpack.c.bf16 %v59_v7, %v58_v6  ;;  %v42_v9 = vld [vmem:[#allocation2] sm:$0xff]  ;;  %v43_v10 = vld [vmem:[#allocation2 + $0x8] sm:$0xff]  ;;  %v61_v14 = vld [vmem:[#allocation2 + $0x98] sm:$0xff]  ;;  %v74_v7 = vlaneseq }
  0x17   :  { %v35_v12 = vld [vmem:[%s912_s0 + $0x48] sm:$0xff]  ;;  %v592_v13 = vpack.c.bf16 %v43_v10, %v42_v9  ;;  %v594_v15 = vpack.c.bf16 %v61_v14, %v60_v11  ;;  %v44_v16 = vld [vmem:[#allocation2 + $0x10] sm:$0xff]  ;;  %v45_v17 = vld [vmem:[#allocation2 + $0x18] sm:$0xff] }
  0x18   :  { %591 = vmatprep.subr.bf16.mxu0 %v590_v8  ;;  %622 = vmatprep.subr.bf16.mxu1 %v590_v8  ;;  %v62_v19 = vld [vmem:[#allocation2 + $0xa0] sm:$0xff]  ;;  %v63_v20 = vld [vmem:[#allocation2 + $0xa8] sm:$0xff]  ;;  %v596_v21 = vpack.c.bf16 %v45_v17, %v44_v16  ;;  %v64_v25 = vld [vmem:[#allocation2 + $0xb0] sm:$0xff]  ;;  %v830_v10 = vand.u32 127, %v74_v7 }
  0x19   :  { %86 = vperm.xlu0 %647, %v763_v3   ;;  %101 = vperm.xlu1 %645, %v34_v4   ;;  %v598_v22 = vpack.c.bf16 %v63_v20, %v62_v19  ;;  %v46_v23 = vld [vmem:[#allocation2 + $0x20] sm:$0xff]  ;;  %v47_v24 = vld [vmem:[#allocation2 + $0x28] sm:$0xff]  ;;  %v65_v26 = vld [vmem:[#allocation2 + $0xb8] sm:$0xff] }
  0x1a   :  { %593 = vmatpush3.bf16.msra.mxu0 %v592_v13  ;;  %630 = vmatpush3.bf16.msra.mxu1 %v592_v13  ;;  %v600_v27 = vpack.c.bf16 %v47_v24, %v46_v23  ;;  %v602_v28 = vpack.c.bf16 %v65_v26, %v64_v25  ;;  %v48_v29 = vld [vmem:[#allocation2 + $0x30] sm:$0xff]  ;;  %v49_v30 = vld [vmem:[#allocation2 + $0x38] sm:$0xff]  ;;  %v66_v32 = vld [vmem:[#allocation2 + $0xc0] sm:$0xff]  ;;  %v717_v13 = vmov 1.0  }
  0x1b   :  { %595 = vmatprep.subr.bf16.mxu0 %v594_v15  ;;  %623 = vmatprep.subr.bf16.mxu1 %v594_v15  ;;  %v28_v31 = vld [vmem:[%s912_s0 + $0x10] sm:$0xff]  ;;  %v67_v33 = vld [vmem:[#allocation2 + $0xc8] sm:$0xff]  ;;  %v604_v34 = vpack.c.bf16 %v49_v30, %v48_v29  ;;  %v50_v36 = vld [vmem:[#allocation2 + $0x40] sm:$0xff] }
  0x1c   :  { %v606_v35 = vpack.c.bf16 %v67_v33, %v66_v32  ;;  %v51_v37 = vld [vmem:[#allocation2 + $0x48] sm:$0xff]  ;;  %v68_v38 = vld [vmem:[#allocation2 + $0xd0] sm:$0xff]  ;;  %v69_v39 = vld [vmem:[#allocation2 + $0xd8] sm:$0xff] }
  0x1d   :  { %92 = vperm.xlu0 %647, %v772_v5   ;;  %646 = vset.pattern.permute.xlu1 %v716_v18  ;;  %v36_v40 = vld [vmem:[%s912_s0 + $0x50] sm:$0xff]  ;;  %v608_v41 = vpack.c.bf16 %v51_v37, %v50_v36  ;;  %v610_v42 = vpack.c.bf16 %v69_v39, %v68_v38  ;;  %v53_v44 = vld [vmem:[#allocation2 + $0x58] sm:$0xff]  ;;  %v70_v45 = vld [vmem:[#allocation2 + $0xe0] sm:$0xff] }
  0x1e   :  { %200 = vperm.xlu1 %646, %v35_v12   ;;  %597 = vmatpush3.bf16.msra.mxu0 %v596_v21  ;;  %v52_v43 = vld [vmem:[#allocation2 + $0x50] sm:$0xff]  ;;  %v71_v46 = vld [vmem:[#allocation2 + $0xe8] sm:$0xff]  ;;  %v54_v49 = vld [vmem:[#allocation2 + $0x60] sm:$0xff] }
  0x1f   :  { %599 = vmatprep.subr.bf16.mxu0 %v598_v22  ;;  %631 = vmatpush3.bf16.msra.mxu1 %v596_v21  ;;  %v612_v47 = vpack.c.bf16 %v53_v44, %v52_v43  ;;  %v614_v48 = vpack.c.bf16 %v71_v46, %v70_v45  ;;  %v55_v50 = vld [vmem:[#allocation2 + $0x68] sm:$0xff]  ;;  %v72_v51 = vld [vmem:[#allocation2 + $0xf0] sm:$0xff]  ;;  %v73_v52 = vld [vmem:[#allocation2 + $0xf8] sm:$0xff] }
  0x20   :  { %624 = vmatprep.subr.bf16.mxu1 %v598_v22  ;;  %v37_v53 = vld [vmem:[%s912_s0 + $0x58] sm:$0xff]  ;;  %v38_v54 = vld [vmem:[%s912_s0 + $0x60] sm:$0xff]  ;;  %v616_v55 = vpack.c.bf16 %v55_v50, %v54_v49  ;;  %v618_v56 = vpack.c.bf16 %v73_v52, %v72_v51  ;;  %v56_v57 = vld [vmem:[#allocation2 + $0x70] sm:$0xff] }
  0x21   :  { %656 = vset.pattern.permute.xlu0 %v716_v18  ;;  %v57_v58 = vld [vmem:[#allocation2 + $0x78] sm:$0xff]  ;;  %v40_v60 = vld [vmem:[%s912_s0 + $0x70] sm:$0xff]  ;;  %v30_v61 = vld [vmem:[%s912_s0 + $0x20] sm:$0xff] }
  0x22   :  { %173 = vperm.xlu0 %656, %v26_v2   ;;  %648 = vset.pattern.permute.xlu1 %v715_v0  ;;  %v620_v59 = vpack.c.bf16 %v57_v58, %v56_v57  ;;  %v33_v62 = vld [vmem:[%s912_s0 + $0x38] sm:$0xff]  ;;  %v39_v63 = vld [vmem:[%s912_s0 + $0x68] sm:$0xff] }
  0x23   :  { %104 = vperm.xlu1 %648, %v35_v12   ;;  %601 = vmatpush3.bf16.msra.mxu0 %v600_v27  ;;  %v41_v2 = vld [vmem:[%s912_s0 + $0x78] sm:$0xff] }
  0x24   :  { %603 = vmatprep.subr.bf16.mxu0 %v602_v28  ;;  %632 = vmatpush3.bf16.msra.mxu1 %v600_v27 }
  0x25   :  { %625 = vmatprep.subr.bf16.mxu1 %v602_v28 }
  0x26   :  { %197 = vperm.xlu0 %656, %v34_v4  }
  0x27   :  { %649 = vset.pattern.permute.xlu1 %v716_v18  ;;  %605 = vmatpush3.bf16.msra.mxu0 %v604_v34 }
  0x28   :  { %179 = vperm.xlu1 %649, %v28_v31   ;;  %607 = vmatprep.subr.bf16.mxu0 %v606_v35 }
  0x29   :  { %633 = vmatpush3.bf16.msra.mxu1 %v604_v34 }
  0x2a   :  { %176 = vperm.xlu0 %656, %v754_v1   ;;  %626 = vmatprep.subr.bf16.mxu1 %v606_v35  ;;  %v32_v1 = vld [vmem:[%s912_s0 + $0x30] sm:$0xff]  ;;  %s718_s0 = smov [#allocation5]  }
  0x2b   :  { %609 = vmatpush3.bf16.msra.mxu0 %v608_v41  ;;  %s434_s27 = sshll.u32 %s718_s0, 4  ;;  %s435_s27 = int_to_ptr.vmem [resolvable:$true] %s434_s27 }
  0x2c   :  { %650 = vset.pattern.permute.xlu1 %v715_v0  ;;  %611 = vmatprep.subr.bf16.mxu0 %v610_v42  ;;  %s686_s28 = scalar_lea.vmem %s435_s27, 2048  ;;  %p691_p9 = scmp.lt.s32.totalorder %s435_s27, %s435_s27 }
  0x2d   :  { %83 = vperm.xlu1 %650, %v28_v31   ;;  %634 = vmatpush3.bf16.msra.mxu1 %v608_v41  ;;  %p687_p8 = scmp.ne.s32.totalorder %s435_s27, %s686_s28  ;;  %p692_p10 = scmp.lt.s32.totalorder %s686_s28, %s686_s28 }
  0x2e   :  { %203 = vperm.xlu0 %656, %v36_v40   ;;  %627 = vmatprep.subr.bf16.mxu1 %v610_v42 }
  0x2f   :  { %613 = vmatpush3.bf16.msra.mxu0 %v612_v47  ;;  %p693_p11 = por %p692_p10, %p691_p9 }
  0x30   :  { %615 = vmatprep.subr.bf16.mxu0 %v614_v48 }
  0x31   :  { %107 = vperm.xlu1 %650, %v36_v40   ;;  %635 = vmatpush3.bf16.msra.mxu1 %v612_v47  ;;  %p694_p12 = pnand %p693_p11, %p687_p8 }
  0x32   :  { %182 = vperm.xlu0 %656, %v763_v3   ;;  %628 = vmatprep.subr.bf16.mxu1 %v614_v48 }
  0x33   :  { %617 = vmatpush3.bf16.msra.mxu0 %v616_v55 }
  0x34   :  { %619 = vmatprep.subr.bf16.mxu0 %v618_v56 }
  0x35   :  { %651 = vset.pattern.permute.xlu1 %v716_v18  ;;  %636 = vmatpush3.bf16.msra.mxu1 %v616_v55 }
  0x36   :  { %206 = vperm.xlu1 %651, %v37_v53   ;;  %209 = vperm.xlu0 %656, %v38_v54  }
  0x37   :  { %621 = vmatpush3.bf16.msra.mxu0 %v620_v59  ;;  %629 = vmatprep.subr.bf16.mxu1 %v618_v56 }
  0x39   :  { %637 = vmatpush3.bf16.msra.mxu1 %v620_v59 }
  0x3a   :  { %652 = vset.pattern.permute.xlu1 %v715_v0  ;;  %188 = vperm.xlu0 %656, %v772_v5  }
  0x3b   :  { %110 = vperm.xlu1 %652, %v37_v53  }
  0x3e   :  { %215 = vperm.xlu0 %656, %v40_v60  }
  0x3f   :  { %653 = vset.pattern.permute.xlu1 %v716_v18 }
  0x40   :  { %185 = vperm.xlu1 %653, %v30_v61  }
  0x42   :  { %194 = vperm.xlu0 %656, %v33_v62  }
  0x44   :  { %654 = vset.pattern.permute.xlu1 %v715_v0 }
  0x45   :  { %89 = vperm.xlu1 %654, %v30_v61  }
  0x46   :  { %661 = vset.pattern.permute.xlu0 %v715_v0 }
  0x47   :  { %98 = vperm.xlu0 %661, %v33_v62  }
  0x49   :  { %113 = vperm.xlu1 %654, %v38_v54  }
  0x4b   :  { %663 = vset.pattern.permute.xlu0 %v716_v18 }
  0x4d   :  { %655 = vset.pattern.permute.xlu1 %v716_v18 }
  0x4e   :  { %212 = vperm.xlu1 %655, %v39_v63  }
  0x52   :  { %657 = vset.pattern.permute.xlu1 %v715_v0 }
  0x53   :  { %116 = vperm.xlu1 %657, %v39_v63  }
  0x57   :  { %658 = vset.pattern.permute.xlu1 %v716_v18 }
  0x58   :  { %191 = vperm.xlu1 %658, %v32_v1  }
  0x5c   :  { %659 = vset.pattern.permute.xlu1 %v715_v0 }
  0x5d   :  { %95 = vperm.xlu1 %659, %v32_v1  }
  0x61   :  { %119 = vperm.xlu1 %659, %v40_v60  }
  0x65   :  { %660 = vset.pattern.permute.xlu1 %v716_v18 }
  0x66   :  { %218 = vperm.xlu1 %660, %v41_v2  }
  0x6a   :  { %662 = vset.pattern.permute.xlu1 %v715_v0 }
  0x6b   :  { %122 = vperm.xlu1 %662, %v41_v2  }
  0x94   :  { %v78_v3 = vpop.permute.xlu1 %77  ;;  %v81_v4 = vpop.permute.xlu0 %80 }
  0x95   :  { %vm124_vm1 = vcmp.eq.s32.totalorder %v830_v10, %v78_v3  ;;  %vm125_vm5 = vcmp.eq.s32.totalorder %v830_v10, %v81_v4 }
  0x98   :  { %v102_v5 = vpop.permute.xlu1 %101  ;;  %v87_v6 = vpop.permute.xlu0 %86 }
  0x99   :  { %vm132_vm3 = vcmp.eq.s32.totalorder %v830_v10, %v102_v5  ;;  %vm127_vm11 = vcmp.eq.s32.totalorder %v830_v10, %v87_v6 }
  0x9c   :  { %v828_v8 = vpop.permute.xlu0 %92 }
  0x9d   :  { %v201_v9 = vpop.permute.xlu1 %200 }
  0x9e   :  { %vm229_vm4 = vcmp.eq.s32.totalorder %v830_v10, %v201_v9 }
  0xa1   :  { %v174_v11 = vpop.permute.xlu0 %173 }
  0xa2   :  { %v105_v12 = vpop.permute.xlu1 %104  ;;  %vm220_vm0 = vcmp.eq.s32.totalorder %v830_v10, %v174_v11 }
  0xa3   :  { %478 = vmatprep.mubr.msk.f32.mxu0 %vm220_vm0, %v717_v13  ;;  %vm133_vm7 = vcmp.eq.s32.totalorder %v830_v10, %v105_v12 }
  0xa4   :  { %479 = vmatmul.mubr.msk.f32.vlgmr.msra.gmra.mrb[0].mxu0 %vm124_vm1, %v717_v13 }
  0xa5   :  { %v198_v0 = vpop.permute.xlu0 %197 }
  0xa6   :  { %vm228_vm2 = vcmp.eq.s32.totalorder %v830_v10, %v198_v0 }
  0xa7   :  { %494 = vmatprep.mubr.msk.f32.mxu1 %vm228_vm2, %v717_v13  ;;  %v180_v14 = vpop.permute.xlu1 %179 }
  0xa8   :  { %495 = vmatmul.mubr.msk.f32.vlgmr.msra.gmra.mrb[0].mxu1 %vm132_vm3, %v717_v13  ;;  %vm222_vm8 = vcmp.eq.s32.totalorder %v830_v10, %v180_v14 }
  0xa9   :  { %v177_v15 = vpop.permute.xlu0 %176  ;;  %496 = vmatprep.mubr.msk.f32.mxu1 %vm229_vm4, %v717_v13  ;;  %vm129_vm4 = vcmp.eq.s32.totalorder %v830_v10, %v828_v8 }
  0xaa   :  { %vm221_vm6 = vcmp.eq.s32.totalorder %v830_v10, %v177_v15 }
  0xab   :  { %480 = vmatprep.mubr.msk.f32.mxu0 %vm221_vm6, %v717_v13 }
  0xac   :  { %481 = vmatmul.mubr.msk.f32.gmra.mrb[2].mxu0 %vm125_vm5, %v717_v13  ;;  %497 = vmatmul.mubr.msk.f32.gmra.mrb[2].mxu1 %vm133_vm7, %v717_v13  ;;  %v84_v16 = vpop.permute.xlu1 %83 }
  0xad   :  { %482 = vmatprep.mubr.msk.f32.mxu0 %vm222_vm8, %v717_v13  ;;  %v204_v17 = vpop.permute.xlu0 %203  ;;  %vm126_vm10 = vcmp.eq.s32.totalorder %v830_v10, %v84_v16 }
  0xae   :  { %vm230_vm9 = vcmp.eq.s32.totalorder %v830_v10, %v204_v17 }
  0xaf   :  { %498 = vmatprep.mubr.msk.f32.mxu1 %vm230_vm9, %v717_v13 }
  0xb0   :  { %483 = vmatmul.mubr.msk.f32.gmra.mrb[4].mxu0 %vm126_vm10, %v717_v13  ;;  %v108_v18 = vpop.permute.xlu1 %107 }
  0xb1   :  { %vm134_vm12 = vcmp.eq.s32.totalorder %v830_v10, %v108_v18  ;;  %v183_v19 = vpop.permute.xlu0 %182 }
  0xb2   :  { %499 = vmatmul.mubr.msk.f32.gmra.mrb[4].mxu1 %vm134_vm12, %v717_v13  ;;  %vm223_vm13 = vcmp.eq.s32.totalorder %v830_v10, %v183_v19 }
  0xb3   :  { %484 = vmatprep.mubr.msk.f32.mxu0 %vm223_vm13, %v717_v13 }
  0xb4   :  { %485 = vmatmul.mubr.msk.f32.gmra.mrb[6].mxu0 %vm127_vm11, %v717_v13 }
  0xb5   :  { %v207_v20 = vpop.permute.xlu1 %206  ;;  %v210_v21 = vpop.permute.xlu0 %209 }
  0xb6   :  { %vm231_vm14 = vcmp.eq.s32.totalorder %v830_v10, %v207_v20  ;;  %vm232_vm15 = vcmp.eq.s32.totalorder %v830_v10, %v210_v21 }
  0xb7   :  { %500 = vmatprep.mubr.msk.f32.mxu1 %vm231_vm14, %v717_v13 }
  0xb9   :  { %v189_v24 = vpop.permute.xlu0 %188 }
  0xba   :  { %v111_v22 = vpop.permute.xlu1 %110  ;;  %vm225_vm2 = vcmp.eq.s32.totalorder %v830_v10, %v189_v24 }
  0xbb   :  { %vm135_vm0 = vcmp.eq.s32.totalorder %v830_v10, %v111_v22 }
  0xbc   :  { %501 = vmatmul.mubr.msk.f32.gmra.mrb[6].mxu1 %vm135_vm0, %v717_v13 }
  0xbd   :  { %502 = vmatprep.mubr.msk.f32.mxu1 %vm232_vm15, %v717_v13  ;;  %v216_v28 = vpop.permute.xlu0 %215 }
  0xbe   :  { %vm234_vm8 = vcmp.eq.s32.totalorder %v830_v10, %v216_v28 }
  0xbf   :  { %v186_v23 = vpop.permute.xlu1 %185 }
  0xc0   :  { %vm224_vm1 = vcmp.eq.s32.totalorder %v830_v10, %v186_v23 }
  0xc1   :  { %486 = vmatprep.mubr.msk.f32.mxu0 %vm224_vm1, %v717_v13  ;;  %v195_v31 = vpop.permute.xlu0 %194 }
  0xc2   :  { %vm227_vm11 = vcmp.eq.s32.totalorder %v830_v10, %v195_v31 }
  0xc4   :  { %v90_v25 = vpop.permute.xlu1 %89 }
  0xc5   :  { %vm128_vm3 = vcmp.eq.s32.totalorder %v830_v10, %v90_v25 }
  0xc6   :  { %487 = vmatmul.mubr.msk.f32.gmra.mrb[8].mxu0 %vm128_vm3, %v717_v13  ;;  %v99_v33 = vpop.permute.xlu0 %98 }
  0xc7   :  { %488 = vmatprep.mubr.msk.f32.mxu0 %vm225_vm2, %v717_v13  ;;  %vm131_vm12 = vcmp.eq.s32.totalorder %v830_v10, %v99_v33 }
  0xc8   :  { %v114_v26 = vpop.permute.xlu1 %113 }
  0xc9   :  { %vm136_vm5 = vcmp.eq.s32.totalorder %v830_v10, %v114_v26 }
  0xca   :  { %489 = vmatmul.mubr.msk.f32.gmra.mrb[10].mxu0 %vm129_vm4, %v717_v13  ;;  %503 = vmatmul.mubr.msk.f32.gmra.mrb[8].mxu1 %vm136_vm5, %v717_v13 }
  0xcd   :  { %v213_v27 = vpop.permute.xlu1 %212 }
  0xce   :  { %vm233_vm6 = vcmp.eq.s32.totalorder %v830_v10, %v213_v27 }
  0xcf   :  { %504 = vmatprep.mubr.msk.f32.mxu1 %vm233_vm6, %v717_v13 }
  0xd2   :  { %v117_v29 = vpop.permute.xlu1 %116 }
  0xd3   :  { %vm137_vm7 = vcmp.eq.s32.totalorder %v830_v10, %v117_v29 }
  0xd4   :  { %505 = vmatmul.mubr.msk.f32.gmra.mrb[10].mxu1 %vm137_vm7, %v717_v13 }
  0xd5   :  { %506 = vmatprep.mubr.msk.f32.mxu1 %vm234_vm8, %v717_v13 }
  0xd7   :  { %v192_v30 = vpop.permute.xlu1 %191 }
  0xd8   :  { %vm226_vm9 = vcmp.eq.s32.totalorder %v830_v10, %v192_v30 }
  0xd9   :  { %490 = vmatprep.mubr.msk.f32.mxu0 %vm226_vm9, %v717_v13 }
  0xdc   :  { %v96_v32 = vpop.permute.xlu1 %95 }
  0xdd   :  { %vm130_vm10 = vcmp.eq.s32.totalorder %v830_v10, %v96_v32 }
  0xde   :  { %491 = vmatmul.mubr.msk.f32.gmra.mrb[12].mxu0 %vm130_vm10, %v717_v13 }
  0xdf   :  { %492 = vmatprep.mubr.msk.f32.mxu0 %vm227_vm11, %v717_v13 }
  0xe0   :  { %v120_v34 = vpop.permute.xlu1 %119 }
  0xe1   :  { %vm138_vm13 = vcmp.eq.s32.totalorder %v830_v10, %v120_v34 }
  0xe2   :  { %507 = vmatmul.mubr.msk.f32.gmra.mrb[12].mxu1 %vm138_vm13, %v717_v13  ;;  %493 = vmatmul.mubr.msk.f32.gmra.mrb[14].mxu0 %vm131_vm12, %v717_v13 }
  0xe5   :  { %v219_v35 = vpop.permute.xlu1 %218 }
  0xe6   :  { %vm235_vm14 = vcmp.eq.s32.totalorder %v830_v10, %v219_v35 }
  0xe7   :  { %508 = vmatprep.mubr.msk.f32.mxu1 %vm235_vm14, %v717_v13 }
  0xea   :  { %v123_v36 = vpop.permute.xlu1 %122 }
  0xeb   :  { %vm139_vm15 = vcmp.eq.s32.totalorder %v830_v10, %v123_v36 }
  0xec   :  { %509 = vmatmul.mubr.msk.f32.gmra.mrb[14].mxu1 %vm139_vm15, %v717_v13 }
 0x177   :  { %v542_v37 = vpop.f32.mrb[0].mxu0 }
 0x178   :  { %v543_v38 = vpop.f32.mrb[1].mxu0 }
 0x179   :  { %v544_v39 = vadd.f32 %v543_v38, %v542_v37 }
 0x17b   :  { %413 = vst [vmem:[#allocation5] sm:$0xff] %v544_v39  ;;  %v566_v40 = vpop.f32.mrb[0].mxu1 }
 0x17c   :  { %v567_v41 = vpop.f32.mrb[1].mxu1 }
 0x17d   :  { %v568_v42 = vadd.f32 %v567_v41, %v566_v40 }
 0x17f   :  { %421 = vst [vmem:[#allocation5 + $0x40] sm:$0xff] %v568_v42  ;;  %v569_v43 = vpop.f32.mrb[2].mxu1  ;;  %v545_v44 = vpop.f32.mrb[2].mxu0 }
 0x180   :  { %v570_v45 = vpop.f32.mrb[3].mxu1  ;;  %v546_v46 = vpop.f32.mrb[3].mxu0 }
 0x181   :  { %v571_v47 = vadd.f32 %v570_v45, %v569_v43  ;;  %v547_v48 = vadd.f32 %v546_v46, %v545_v44 }
 0x183   :  { %422 = vst [vmem:[#allocation5 + $0x48] sm:$0xff] %v571_v47  ;;  %414 = vst [vmem:[#allocation5 + $0x8] sm:$0xff] %v547_v48  ;;  %v548_v49 = vpop.f32.mrb[4].mxu0 }
 0x184   :  { %v549_v50 = vpop.f32.mrb[5].mxu0 }
 0x185   :  { %v550_v51 = vadd.f32 %v549_v50, %v548_v49  ;;  %v572_v52 = vpop.f32.mrb[4].mxu1 }
 0x186   :  { %v573_v53 = vpop.f32.mrb[5].mxu1 }
 0x187   :  { %415 = vst [vmem:[#allocation5 + $0x10] sm:$0xff] %v550_v51  ;;  %v574_v54 = vadd.f32 %v573_v53, %v572_v52  ;;  %v551_v55 = vpop.f32.mrb[6].mxu0 }
 0x188   :  { %v552_v56 = vpop.f32.mrb[7].mxu0 }
 0x189   :  { %423 = vst [vmem:[#allocation5 + $0x50] sm:$0xff] %v574_v54  ;;  %v553_v57 = vadd.f32 %v552_v56, %v551_v55 }
 0x18b   :  { %416 = vst [vmem:[#allocation5 + $0x18] sm:$0xff] %v553_v57 }
 0x18f   :  { %v575_v58 = vpop.f32.mrb[6].mxu1 }
 0x190   :  { %v576_v59 = vpop.f32.mrb[7].mxu1 }
 0x191   :  { %v577_v60 = vadd.f32 %v576_v59, %v575_v58 }
 0x193   :  { %424 = vst [vmem:[#allocation5 + $0x58] sm:$0xff] %v577_v60 }
 0x199   :  { %v554_v61 = vpop.f32.mrb[8].mxu0 }
 0x19a   :  { %v555_v62 = vpop.f32.mrb[9].mxu0 }
 0x19b   :  { %v556_v63 = vadd.f32 %v555_v62, %v554_v61 }
 0x19d   :  { %417 = vst [vmem:[#allocation5 + $0x20] sm:$0xff] %v556_v63  ;;  %v557_v1 = vpop.f32.mrb[10].mxu0  ;;  %v578_v2 = vpop.f32.mrb[8].mxu1 }
 0x19e   :  { %v558_v3 = vpop.f32.mrb[11].mxu0  ;;  %v579_v4 = vpop.f32.mrb[9].mxu1 }
 0x19f   :  { %v559_v5 = vadd.f32 %v558_v3, %v557_v1  ;;  %v580_v6 = vadd.f32 %v579_v4, %v578_v2 }
 0x1a1   :  { %418 = vst [vmem:[#allocation5 + $0x28] sm:$0xff] %v559_v5  ;;  %425 = vst [vmem:[#allocation5 + $0x60] sm:$0xff] %v580_v6 }
 0x1a7   :  { %v581_v7 = vpop.f32.mrb[10].mxu1 }
 0x1a8   :  { %v582_v8 = vpop.f32.mrb[11].mxu1 }
 0x1a9   :  { %v583_v9 = vadd.f32 %v582_v8, %v581_v7 }
 0x1ab   :  { %426 = vst [vmem:[#allocation5 + $0x68] sm:$0xff] %v583_v9 }
 0x1b1   :  { %v560_v10 = vpop.f32.mrb[12].mxu0 }
 0x1b2   :  { %v561_v11 = vpop.f32.mrb[13].mxu0 }
 0x1b3   :  { %v562_v12 = vadd.f32 %v561_v11, %v560_v10 }
 0x1b5   :  { %419 = vst [vmem:[#allocation5 + $0x30] sm:$0xff] %v562_v12  ;;  %v584_v13 = vpop.f32.mrb[12].mxu1  ;;  %v563_v0 = vpop.f32.mrb[14].mxu0 }
 0x1b6   :  { %v585_v14 = vpop.f32.mrb[13].mxu1  ;;  %v564_v15 = vpop.f32.mrb[15].mxu0 }
 0x1b7   :  { %v586_v16 = vadd.f32 %v585_v14, %v584_v13  ;;  %v565_v17 = vadd.f32 %v564_v15, %v563_v0 }
 0x1b9   :  { %427 = vst [vmem:[#allocation5 + $0x70] sm:$0xff] %v586_v16  ;;  %420 = vst [vmem:[#allocation5 + $0x38] sm:$0xff] %v565_v17 }
 0x1bf   :  { %v587_v18 = vpop.f32.mrb[14].mxu1 }
 0x1c0   :  { %v588_v19 = vpop.f32.mrb[15].mxu1 }
 0x1c1   :  { %v589_v20 = vadd.f32 %v588_v19, %v587_v18 }
 0x1c3   :  { %428 = vst [vmem:[#allocation5 + $0x78] sm:$0xff] %v589_v20 }
 0x1c4   :  { %697 = shalt.err (!%p694_p12)
}
 0x1c5   :  { %s698_s3 = scalar_lea.hbm %s914_s2, 2048 }
 0x1c6   :  { %p699_p13 = scmp.ne.s32.totalorder %s914_s2, %s698_s3  ;;  %p702_p0 = scmp.lt.u32.totalorder %s698_s3, %s914_s2 }
 0x1c8   :  { %p704_p1 = pnand %p702_p0, %p699_p13 }
 0x1ca   :  { %707 = shalt.err (!%p704_p1)
}
 0x1cb   :  { %440 = dma.vmem_to_hbm [thread:$0]  %s435_s27, 2048, %s914_s2, [#allocation4], %s713_s19, %s713_s19, %s714_s20  }
 0x1cc   :  { %710 = dma.done.wait [#allocation4], 2048  }
 0x1cd   :  { %711 = vsyncadd [#allocation4], 4294965248 }
 0x1ce   :  { %444 = vsyncpa [#allocation3], 1 }
 0x1cf   :  { %445 = vsyncpa [#allocation4], 1 }

// kernel: tpu_custom_call.1
= control target key start
LH: loop header
LB: loop body
LE: loop exit
PB: predicated region body
PF: predicated region fallthrough
CT: control target
= control target key end

     0   :  { %7 = vsyncpa [#allocation3], 0  ;;  %s912_s0 = inlined_call_operand.vmem [shape: s32[128,2], index: 0, kind: input, shape index: {}]   ;;  %s913_s1 = inlined_call_operand.hbm [shape: f32[256,128], index: 1, kind: input, shape index: {}]   ;;  %s914_s2 = inlined_call_operand.hbm [shape: f32[128,128], index: 2, kind: output, shape index: {}]  }
   0x1   :  { %8 = vsyncpa [#allocation4], 0  ;;  %s712_s9 = smov [#allocation2]   ;;  %s664_s13 = scalar_lea.hbm %s913_s1, 4096 }
   0x2   :  { %s16_s10 = sshll.u32 %s712_s9, 4  ;;  %p665_p0 = scmp.ne.s32.totalorder %s913_s1, %s664_s13  ;;  %s17_s10 = int_to_ptr.vmem [resolvable:$true] %s16_s10 }
   0x3   :  { %p668_p1 = scmp.lt.u32.totalorder %s664_s13, %s913_s1 }
   0x5   :  { %p670_p2 = pnand %p668_p1, %p665_p0 }
   0x7   :  { %673 = shalt.err (!%p670_p2)
}
   0x8   :  { %s674_s18 = scalar_lea.vmem %s17_s10, 4096  ;;  %p679_p4 = scmp.lt.s32.totalorder %s17_s10, %s17_s10 }
   0x9   :  { %p675_p3 = scmp.ne.s32.totalorder %s17_s10, %s674_s18  ;;  %p680_p5 = scmp.lt.s32.totalorder %s674_s18, %s674_s18 }
   0xb   :  { %p681_p6 = por %p680_p5, %p679_p4 }
   0xd   :  { %p682_p7 = pnand %p681_p6, %p675_p3 }
   0xf   :  { %685 = shalt.err (!%p682_p7)
}
  0x10   :  { %s713_s19 = smov 128   ;;  %s714_s20 = smov 8  }
  0x11   :  { %22 = dma.hbm_to_vmem [thread:$0]  %s913_s1, 4096, %s17_s10, [#allocation3], %s713_s19, %s713_s19, %s714_s20  }
  0x12   :  { %708 = dma.done.wait [#allocation3], 4096  }
  0x13   :  { %709 = vsyncadd [#allocation3], 4294963200  ;;  %v715_v0 = vmov 0   ;;  %v754_v1 = vld [vmem:[%s912_s0 + $0x8] sm:$0xff]  ;;  %v26_v2 = vld [vmem:[%s912_s0] sm:$0xff]  ;;  %v716_v18 = vmov 1  }
  0x14   :  { %647 = vset.pattern.permute.xlu0 %v715_v0  ;;  %645 = vset.pattern.permute.xlu1 %v715_v0  ;;  %v763_v3 = vld [vmem:[%s912_s0 + $0x18] sm:$0xff]  ;;  %v34_v4 = vld [vmem:[%s912_s0 + $0x40] sm:$0xff]  ;;  %v772_v5 = vld [vmem:[%s912_s0 + $0x28] sm:$0xff] }
  0x15   :  { %80 = vperm.xlu0 %647, %v754_v1   ;;  %77 = vperm.xlu1 %645, %v26_v2   ;;  %v58_v6 = vld [vmem:[#allocation2 + $0x80] sm:$0xff]  ;;  %v59_v7 = vld [vmem:[#allocation2 + $0x88] sm:$0xff]  ;;  %v60_v11 = vld [vmem:[#allocation2 + $0x90] sm:$0xff] }
  0x16   :  { %v590_v8 = vpack.c.bf16 %v59_v7, %v58_v6  ;;  %v42_v9 = vld [vmem:[#allocation2] sm:$0xff]  ;;  %v43_v10 = vld [vmem:[#allocation2 + $0x8] sm:$0xff]  ;;  %v61_v14 = vld [vmem:[#allocation2 + $0x98] sm:$0xff]  ;;  %v74_v7 = vlaneseq }
  0x17   :  { %v35_v12 = vld [vmem:[%s912_s0 + $0x48] sm:$0xff]  ;;  %v592_v13 = vpack.c.bf16 %v43_v10, %v42_v9  ;;  %v594_v15 = vpack.c.bf16 %v61_v14, %v60_v11  ;;  %v44_v16 = vld [vmem:[#allocation2 + $0x10] sm:$0xff]  ;;  %v45_v17 = vld [vmem:[#allocation2 + $0x18] sm:$0xff] }
  0x18   :  { %591 = vmatprep.subr.bf16.mxu0 %v590_v8  ;;  %622 = vmatprep.subr.bf16.mxu1 %v590_v8  ;;  %v62_v19 = vld [vmem:[#allocation2 + $0xa0] sm:$0xff]  ;;  %v63_v20 = vld [vmem:[#allocation2 + $0xa8] sm:$0xff]  ;;  %v596_v21 = vpack.c.bf16 %v45_v17, %v44_v16  ;;  %v64_v25 = vld [vmem:[#allocation2 + $0xb0] sm:$0xff]  ;;  %v830_v10 = vand.u32 127, %v74_v7 }
  0x19   :  { %86 = vperm.xlu0 %647, %v763_v3   ;;  %101 = vperm.xlu1 %645, %v34_v4   ;;  %v598_v22 = vpack.c.bf16 %v63_v20, %v62_v19  ;;  %v46_v23 = vld [vmem:[#allocation2 + $0x20] sm:$0xff]  ;;  %v47_v24 = vld [vmem:[#allocation2 + $0x28] sm:$0xff]  ;;  %v65_v26 = vld [vmem:[#allocation2 + $0xb8] sm:$0xff] }
  0x1a   :  { %593 = vmatpush3.bf16.msra.mxu0 %v592_v13  ;;  %630 = vmatpush3.bf16.msra.mxu1 %v592_v13  ;;  %v600_v27 = vpack.c.bf16 %v47_v24, %v46_v23  ;;  %v602_v28 = vpack.c.bf16 %v65_v26, %v64_v25  ;;  %v48_v29 = vld [vmem:[#allocation2 + $0x30] sm:$0xff]  ;;  %v49_v30 = vld [vmem:[#allocation2 + $0x38] sm:$0xff]  ;;  %v66_v32 = vld [vmem:[#allocation2 + $0xc0] sm:$0xff]  ;;  %v717_v13 = vmov 1.0  }
  0x1b   :  { %595 = vmatprep.subr.bf16.mxu0 %v594_v15  ;;  %623 = vmatprep.subr.bf16.mxu1 %v594_v15  ;;  %v28_v31 = vld [vmem:[%s912_s0 + $0x10] sm:$0xff]  ;;  %v67_v33 = vld [vmem:[#allocation2 + $0xc8] sm:$0xff]  ;;  %v604_v34 = vpack.c.bf16 %v49_v30, %v48_v29  ;;  %v50_v36 = vld [vmem:[#allocation2 + $0x40] sm:$0xff] }
  0x1c   :  { %v606_v35 = vpack.c.bf16 %v67_v33, %v66_v32  ;;  %v51_v37 = vld [vmem:[#allocation2 + $0x48] sm:$0xff]  ;;  %v68_v38 = vld [vmem:[#allocation2 + $0xd0] sm:$0xff]  ;;  %v69_v39 = vld [vmem:[#allocation2 + $0xd8] sm:$0xff] }
  0x1d   :  { %92 = vperm.xlu0 %647, %v772_v5   ;;  %646 = vset.pattern.permute.xlu1 %v716_v18  ;;  %v36_v40 = vld [vmem:[%s912_s0 + $0x50] sm:$0xff]  ;;  %v608_v41 = vpack.c.bf16 %v51_v37, %v50_v36  ;;  %v610_v42 = vpack.c.bf16 %v69_v39, %v68_v38  ;;  %v53_v44 = vld [vmem:[#allocation2 + $0x58] sm:$0xff]  ;;  %v70_v45 = vld [vmem:[#allocation2 + $0xe0] sm:$0xff] }
  0x1e   :  { %200 = vperm.xlu1 %646, %v35_v12   ;;  %597 = vmatpush3.bf16.msra.mxu0 %v596_v21  ;;  %v52_v43 = vld [vmem:[#allocation2 + $0x50] sm:$0xff]  ;;  %v71_v46 = vld [vmem:[#allocation2 + $0xe8] sm:$0xff]  ;;  %v54_v49 = vld [vmem:[#allocation2 + $0x60] sm:$0xff] }
  0x1f   :  { %599 = vmatprep.subr.bf16.mxu0 %v598_v22  ;;  %631 = vmatpush3.bf16.msra.mxu1 %v596_v21  ;;  %v612_v47 = vpack.c.bf16 %v53_v44, %v52_v43  ;;  %v614_v48 = vpack.c.bf16 %v71_v46, %v70_v45  ;;  %v55_v50 = vld [vmem:[#allocation2 + $0x68] sm:$0xff]  ;;  %v72_v51 = vld [vmem:[#allocation2 + $0xf0] sm:$0xff]  ;;  %v73_v52 = vld [vmem:[#allocation2 + $0xf8] sm:$0xff] }
  0x20   :  { %624 = vmatprep.subr.bf16.mxu1 %v598_v22  ;;  %v37_v53 = vld [vmem:[%s912_s0 + $0x58] sm:$0xff]  ;;  %v38_v54 = vld [vmem:[%s912_s0 + $0x60] sm:$0xff]  ;;  %v616_v55 = vpack.c.bf16 %v55_v50, %v54_v49  ;;  %v618_v56 = vpack.c.bf16 %v73_v52, %v72_v51  ;;  %v56_v57 = vld [vmem:[#allocation2 + $0x70] sm:$0xff] }
  0x21   :  { %656 = vset.pattern.permute.xlu0 %v716_v18  ;;  %v57_v58 = vld [vmem:[#allocation2 + $0x78] sm:$0xff]  ;;  %v40_v60 = vld [vmem:[%s912_s0 + $0x70] sm:$0xff]  ;;  %v30_v61 = vld [vmem:[%s912_s0 + $0x20] sm:$0xff] }
  0x22   :  { %173 = vperm.xlu0 %656, %v26_v2   ;;  %648 = vset.pattern.permute.xlu1 %v715_v0  ;;  %v620_v59 = vpack.c.bf16 %v57_v58, %v56_v57  ;;  %v33_v62 = vld [vmem:[%s912_s0 + $0x38] sm:$0xff]  ;;  %v39_v63 = vld [vmem:[%s912_s0 + $0x68] sm:$0xff] }
  0x23   :  { %104 = vperm.xlu1 %648, %v35_v12   ;;  %601 = vmatpush3.bf16.msra.mxu0 %v600_v27  ;;  %v41_v2 = vld [vmem:[%s912_s0 + $0x78] sm:$0xff] }
  0x24   :  { %603 = vmatprep.subr.bf16.mxu0 %v602_v28  ;;  %632 = vmatpush3.bf16.msra.mxu1 %v600_v27 }
  0x25   :  { %625 = vmatprep.subr.bf16.mxu1 %v602_v28 }
  0x26   :  { %197 = vperm.xlu0 %656, %v34_v4  }
  0x27   :  { %649 = vset.pattern.permute.xlu1 %v716_v18  ;;  %605 = vmatpush3.bf16.msra.mxu0 %v604_v34 }
  0x28   :  { %179 = vperm.xlu1 %649, %v28_v31   ;;  %607 = vmatprep.subr.bf16.mxu0 %v606_v35 }
  0x29   :  { %633 = vmatpush3.bf16.msra.mxu1 %v604_v34 }
  0x2a   :  { %176 = vperm.xlu0 %656, %v754_v1   ;;  %626 = vmatprep.subr.bf16.mxu1 %v606_v35  ;;  %v32_v1 = vld [vmem:[%s912_s0 + $0x30] sm:$0xff]  ;;  %s718_s0 = smov [#allocation5]  }
  0x2b   :  { %609 = vmatpush3.bf16.msra.mxu0 %v608_v41  ;;  %s434_s27 = sshll.u32 %s718_s0, 4  ;;  %s435_s27 = int_to_ptr.vmem [resolvable:$true] %s434_s27 }
  0x2c   :  { %650 = vset.pattern.permute.xlu1 %v715_v0  ;;  %611 = vmatprep.subr.bf16.mxu0 %v610_v42  ;;  %s686_s28 = scalar_lea.vmem %s435_s27, 2048  ;;  %p691_p9 = scmp.lt.s32.totalorder %s435_s27, %s435_s27 }
  0x2d   :  { %83 = vperm.xlu1 %650, %v28_v31   ;;  %634 = vmatpush3.bf16.msra.mxu1 %v608_v41  ;;  %p687_p8 = scmp.ne.s32.totalorder %s435_s27, %s686_s28  ;;  %p692_p10 = scmp.lt.s32.totalorder %s686_s28, %s686_s28 }
  0x2e   :  { %203 = vperm.xlu0 %656, %v36_v40   ;;  %627 = vmatprep.subr.bf16.mxu1 %v610_v42 }
  0x2f   :  { %613 = vmatpush3.bf16.msra.mxu0 %v612_v47  ;;  %p693_p11 = por %p692_p10, %p691_p9 }
  0x30   :  { %615 = vmatprep.subr.bf16.mxu0 %v614_v48 }
  0x31   :  { %107 = vperm.xlu1 %650, %v36_v40   ;;  %635 = vmatpush3.bf16.msra.mxu1 %v612_v47  ;;  %p694_p12 = pnand %p693_p11, %p687_p8 }
  0x32   :  { %182 = vperm.xlu0 %656, %v763_v3   ;;  %628 = vmatprep.subr.bf16.mxu1 %v614_v48 }
  0x33   :  { %617 = vmatpush3.bf16.msra.mxu0 %v616_v55 }
  0x34   :  { %619 = vmatprep.subr.bf16.mxu0 %v618_v56 }
  0x35   :  { %651 = vset.pattern.permute.xlu1 %v716_v18  ;;  %636 = vmatpush3.bf16.msra.mxu1 %v616_v55 }
  0x36   :  { %206 = vperm.xlu1 %651, %v37_v53   ;;  %209 = vperm.xlu0 %656, %v38_v54  }
  0x37   :  { %621 = vmatpush3.bf16.msra.mxu0 %v620_v59  ;;  %629 = vmatprep.subr.bf16.mxu1 %v618_v56 }
  0x39   :  { %637 = vmatpush3.bf16.msra.mxu1 %v620_v59 }
  0x3a   :  { %652 = vset.pattern.permute.xlu1 %v715_v0  ;;  %188 = vperm.xlu0 %656, %v772_v5  }
  0x3b   :  { %110 = vperm.xlu1 %652, %v37_v53  }
  0x3e   :  { %215 = vperm.xlu0 %656, %v40_v60  }
  0x3f   :  { %653 = vset.pattern.permute.xlu1 %v716_v18 }
  0x40   :  { %185 = vperm.xlu1 %653, %v30_v61  }
  0x42   :  { %194 = vperm.xlu0 %656, %v33_v62  }
  0x44   :  { %654 = vset.pattern.permute.xlu1 %v715_v0 }
  0x45   :  { %89 = vperm.xlu1 %654, %v30_v61  }
  0x46   :  { %661 = vset.pattern.permute.xlu0 %v715_v0 }
  0x47   :  { %98 = vperm.xlu0 %661, %v33_v62  }
  0x49   :  { %113 = vperm.xlu1 %654, %v38_v54  }
  0x4b   :  { %663 = vset.pattern.permute.xlu0 %v716_v18 }
  0x4d   :  { %655 = vset.pattern.permute.xlu1 %v716_v18 }
  0x4e   :  { %212 = vperm.xlu1 %655, %v39_v63  }
  0x52   :  { %657 = vset.pattern.permute.xlu1 %v715_v0 }
  0x53   :  { %116 = vperm.xlu1 %657, %v39_v63  }
  0x57   :  { %658 = vset.pattern.permute.xlu1 %v716_v18 }
  0x58   :  { %191 = vperm.xlu1 %658, %v32_v1  }
  0x5c   :  { %659 = vset.pattern.permute.xlu1 %v715_v0 }
  0x5d   :  { %95 = vperm.xlu1 %659, %v32_v1  }
  0x61   :  { %119 = vperm.xlu1 %659, %v40_v60  }
  0x65   :  { %660 = vset.pattern.permute.xlu1 %v716_v18 }
  0x66   :  { %218 = vperm.xlu1 %660, %v41_v2  }
  0x6a   :  { %662 = vset.pattern.permute.xlu1 %v715_v0 }
  0x6b   :  { %122 = vperm.xlu1 %662, %v41_v2  }
  0x94   :  { %v78_v3 = vpop.permute.xlu1 %77  ;;  %v81_v4 = vpop.permute.xlu0 %80 }
  0x95   :  { %vm124_vm1 = vcmp.eq.s32.totalorder %v830_v10, %v78_v3  ;;  %vm125_vm5 = vcmp.eq.s32.totalorder %v830_v10, %v81_v4 }
  0x98   :  { %v102_v5 = vpop.permute.xlu1 %101  ;;  %v87_v6 = vpop.permute.xlu0 %86 }
  0x99   :  { %vm132_vm3 = vcmp.eq.s32.totalorder %v830_v10, %v102_v5  ;;  %vm127_vm11 = vcmp.eq.s32.totalorder %v830_v10, %v87_v6 }
  0x9c   :  { %v828_v8 = vpop.permute.xlu0 %92 }
  0x9d   :  { %v201_v9 = vpop.permute.xlu1 %200 }
  0x9e   :  { %vm229_vm4 = vcmp.eq.s32.totalorder %v830_v10, %v201_v9 }
  0xa1   :  { %v174_v11 = vpop.permute.xlu0 %173 }
  0xa2   :  { %v105_v12 = vpop.permute.xlu1 %104  ;;  %vm220_vm0 = vcmp.eq.s32.totalorder %v830_v10, %v174_v11 }
  0xa3   :  { %478 = vmatprep.mubr.msk.f32.mxu0 %vm220_vm0, %v717_v13  ;;  %vm133_vm7 = vcmp.eq.s32.totalorder %v830_v10, %v105_v12 }
  0xa4   :  { %479 = vmatmul.mubr.msk.f32.vlgmr.msra.gmra.mrb[0].mxu0 %vm124_vm1, %v717_v13 }
  0xa5   :  { %v198_v0 = vpop.permute.xlu0 %197 }
  0xa6   :  { %vm228_vm2 = vcmp.eq.s32.totalorder %v830_v10, %v198_v0 }
  0xa7   :  { %494 = vmatprep.mubr.msk.f32.mxu1 %vm228_vm2, %v717_v13  ;;  %v180_v14 = vpop.permute.xlu1 %179 }
  0xa8   :  { %495 = vmatmul.mubr.msk.f32.vlgmr.msra.gmra.mrb[0].mxu1 %vm132_vm3, %v717_v13  ;;  %vm222_vm8 = vcmp.eq.s32.totalorder %v830_v10, %v180_v14 }
  0xa9   :  { %v177_v15 = vpop.permute.xlu0 %176  ;;  %496 = vmatprep.mubr.msk.f32.mxu1 %vm229_vm4, %v717_v13  ;;  %vm129_vm4 = vcmp.eq.s32.totalorder %v830_v10, %v828_v8 }
  0xaa   :  { %vm221_vm6 = vcmp.eq.s32.totalorder %v830_v10, %v177_v15 }
  0xab   :  { %480 = vmatprep.mubr.msk.f32.mxu0 %vm221_vm6, %v717_v13 }
  0xac   :  { %481 = vmatmul.mubr.msk.f32.gmra.mrb[2].mxu0 %vm125_vm5, %v717_v13  ;;  %497 = vmatmul.mubr.msk.f32.gmra.mrb[2].mxu1 %vm133_vm7, %v717_v13  ;;  %v84_v16 = vpop.permute.xlu1 %83 }
  0xad   :  { %482 = vmatprep.mubr.msk.f32.mxu0 %vm222_vm8, %v717_v13  ;;  %v204_v17 = vpop.permute.xlu0 %203  ;;  %vm126_vm10 = vcmp.eq.s32.totalorder %v830_v10, %v84_v16 }
  0xae   :  { %vm230_vm9 = vcmp.eq.s32.totalorder %v830_v10, %v204_v17 }
  0xaf   :  { %498 = vmatprep.mubr.msk.f32.mxu1 %vm230_vm9, %v717_v13 }
  0xb0   :  { %483 = vmatmul.mubr.msk.f32.gmra.mrb[4].mxu0 %vm126_vm10, %v717_v13  ;;  %v108_v18 = vpop.permute.xlu1 %107 }
  0xb1   :  { %vm134_vm12 = vcmp.eq.s32.totalorder %v830_v10, %v108_v18  ;;  %v183_v19 = vpop.permute.xlu0 %182 }
  0xb2   :  { %499 = vmatmul.mubr.msk.f32.gmra.mrb[4].mxu1 %vm134_vm12, %v717_v13  ;;  %vm223_vm13 = vcmp.eq.s32.totalorder %v830_v10, %v183_v19 }
  0xb3   :  { %484 = vmatprep.mubr.msk.f32.mxu0 %vm223_vm13, %v717_v13 }
  0xb4   :  { %485 = vmatmul.mubr.msk.f32.gmra.mrb[6].mxu0 %vm127_vm11, %v717_v13 }
  0xb5   :  { %v207_v20 = vpop.permute.xlu1 %206  ;;  %v210_v21 = vpop.permute.xlu0 %209 }
  0xb6   :  { %vm231_vm14 = vcmp.eq.s32.totalorder %v830_v10, %v207_v20  ;;  %vm232_vm15 = vcmp.eq.s32.totalorder %v830_v10, %v210_v21 }
  0xb7   :  { %500 = vmatprep.mubr.msk.f32.mxu1 %vm231_vm14, %v717_v13 }
  0xb9   :  { %v189_v24 = vpop.permute.xlu0 %188 }
  0xba   :  { %v111_v22 = vpop.permute.xlu1 %110  ;;  %vm225_vm2 = vcmp.eq.s32.totalorder %v830_v10, %v189_v24 }
  0xbb   :  { %vm135_vm0 = vcmp.eq.s32.totalorder %v830_v10, %v111_v22 }
  0xbc   :  { %501 = vmatmul.mubr.msk.f32.gmra.mrb[6].mxu1 %vm135_vm0, %v717_v13 }
  0xbd   :  { %502 = vmatprep.mubr.msk.f32.mxu1 %vm232_vm15, %v717_v13  ;;  %v216_v28 = vpop.permute.xlu0 %215 }
  0xbe   :  { %vm234_vm8 = vcmp.eq.s32.totalorder %v830_v10, %v216_v28 }
  0xbf   :  { %v186_v23 = vpop.permute.xlu1 %185 }
  0xc0   :  { %vm224_vm1 = vcmp.eq.s32.totalorder %v830_v10, %v186_v23 }
  0xc1   :  { %486 = vmatprep.mubr.msk.f32.mxu0 %vm224_vm1, %v717_v13  ;;  %v195_v31 = vpop.permute.xlu0 %194 }
  0xc2   :  { %vm227_vm11 = vcmp.eq.s32.totalorder %v830_v10, %v195_v31 }
  0xc4   :  { %v90_v25 = vpop.permute.xlu1 %89 }
  0xc5   :  { %vm128_vm3 = vcmp.eq.s32.totalorder %v830_v10, %v90_v25 }
  0xc6   :  { %487 = vmatmul.mubr.msk.f32.gmra.mrb[8].mxu0 %vm128_vm3, %v717_v13  ;;  %v99_v33 = vpop.permute.xlu0 %98 }
  0xc7   :  { %488 = vmatprep.mubr.msk.f32.mxu0 %vm225_vm2, %v717_v13  ;;  %vm131_vm12 = vcmp.eq.s32.totalorder %v830_v10, %v99_v33 }
  0xc8   :  { %v114_v26 = vpop.permute.xlu1 %113 }
  0xc9   :  { %vm136_vm5 = vcmp.eq.s32.totalorder %v830_v10, %v114_v26 }
  0xca   :  { %489 = vmatmul.mubr.msk.f32.gmra.mrb[10].mxu0 %vm129_vm4, %v717_v13  ;;  %503 = vmatmul.mubr.msk.f32.gmra.mrb[8].mxu1 %vm136_vm5, %v717_v13 }
  0xcd   :  { %v213_v27 = vpop.permute.xlu1 %212 }
  0xce   :  { %vm233_vm6 = vcmp.eq.s32.totalorder %v830_v10, %v213_v27 }
  0xcf   :  { %504 = vmatprep.mubr.msk.f32.mxu1 %vm233_vm6, %v717_v13 }
  0xd2   :  { %v117_v29 = vpop.permute.xlu1 %116 }
  0xd3   :  { %vm137_vm7 = vcmp.eq.s32.totalorder %v830_v10, %v117_v29 }
  0xd4   :  { %505 = vmatmul.mubr.msk.f32.gmra.mrb[10].mxu1 %vm137_vm7, %v717_v13 }
  0xd5   :  { %506 = vmatprep.mubr.msk.f32.mxu1 %vm234_vm8, %v717_v13 }
  0xd7   :  { %v192_v30 = vpop.permute.xlu1 %191 }
  0xd8   :  { %vm226_vm9 = vcmp.eq.s32.totalorder %v830_v10, %v192_v30 }
  0xd9   :  { %490 = vmatprep.mubr.msk.f32.mxu0 %vm226_vm9, %v717_v13 }
  0xdc   :  { %v96_v32 = vpop.permute.xlu1 %95 }
  0xdd   :  { %vm130_vm10 = vcmp.eq.s32.totalorder %v830_v10, %v96_v32 }
  0xde   :  { %491 = vmatmul.mubr.msk.f32.gmra.mrb[12].mxu0 %vm130_vm10, %v717_v13 }
  0xdf   :  { %492 = vmatprep.mubr.msk.f32.mxu0 %vm227_vm11, %v717_v13 }
  0xe0   :  { %v120_v34 = vpop.permute.xlu1 %119 }
  0xe1   :  { %vm138_vm13 = vcmp.eq.s32.totalorder %v830_v10, %v120_v34 }
  0xe2   :  { %507 = vmatmul.mubr.msk.f32.gmra.mrb[12].mxu1 %vm138_vm13, %v717_v13  ;;  %493 = vmatmul.mubr.msk.f32.gmra.mrb[14].mxu0 %vm131_vm12, %v717_v13 }
  0xe5   :  { %v219_v35 = vpop.permute.xlu1 %218 }
  0xe6   :  { %vm235_vm14 = vcmp.eq.s32.totalorder %v830_v10, %v219_v35 }
  0xe7   :  { %508 = vmatprep.mubr.msk.f32.mxu1 %vm235_vm14, %v717_v13 }
  0xea   :  { %v123_v36 = vpop.permute.xlu1 %122 }
  0xeb   :  { %vm139_vm15 = vcmp.eq.s32.totalorder %v830_v10, %v123_v36 }
  0xec   :  { %509 = vmatmul.mubr.msk.f32.gmra.mrb[14].mxu1 %vm139_vm15, %v717_v13 }
 0x177   :  { %v542_v37 = vpop.f32.mrb[0].mxu0 }
 0x178   :  { %v543_v38 = vpop.f32.mrb[1].mxu0 }
 0x179   :  { %v544_v39 = vadd.f32 %v543_v38, %v542_v37 }
 0x17b   :  { %413 = vst [vmem:[#allocation5] sm:$0xff] %v544_v39  ;;  %v566_v40 = vpop.f32.mrb[0].mxu1 }
 0x17c   :  { %v567_v41 = vpop.f32.mrb[1].mxu1 }
 0x17d   :  { %v568_v42 = vadd.f32 %v567_v41, %v566_v40 }
 0x17f   :  { %421 = vst [vmem:[#allocation5 + $0x40] sm:$0xff] %v568_v42  ;;  %v569_v43 = vpop.f32.mrb[2].mxu1  ;;  %v545_v44 = vpop.f32.mrb[2].mxu0 }
 0x180   :  { %v570_v45 = vpop.f32.mrb[3].mxu1  ;;  %v546_v46 = vpop.f32.mrb[3].mxu0 }
 0x181   :  { %v571_v47 = vadd.f32 %v570_v45, %v569_v43  ;;  %v547_v48 = vadd.f32 %v546_v46, %v545_v44 }
 0x183   :  { %422 = vst [vmem:[#allocation5 + $0x48] sm:$0xff] %v571_v47  ;;  %414 = vst [vmem:[#allocation5 + $0x8] sm:$0xff] %v547_v48  ;;  %v548_v49 = vpop.f32.mrb[4].mxu0 }
 0x184   :  { %v549_v50 = vpop.f32.mrb[5].mxu0 }
 0x185   :  { %v550_v51 = vadd.f32 %v549_v50, %v548_v49  ;;  %v572_v52 = vpop.f32.mrb[4].mxu1 }
 0x186   :  { %v573_v53 = vpop.f32.mrb[5].mxu1 }
 0x187   :  { %415 = vst [vmem:[#allocation5 + $0x10] sm:$0xff] %v550_v51  ;;  %v574_v54 = vadd.f32 %v573_v53, %v572_v52  ;;  %v551_v55 = vpop.f32.mrb[6].mxu0 }
 0x188   :  { %v552_v56 = vpop.f32.mrb[7].mxu0 }
 0x189   :  { %423 = vst [vmem:[#allocation5 + $0x50] sm:$0xff] %v574_v54  ;;  %v553_v57 = vadd.f32 %v552_v56, %v551_v55 }
 0x18b   :  { %416 = vst [vmem:[#allocation5 + $0x18] sm:$0xff] %v553_v57 }
 0x18f   :  { %v575_v58 = vpop.f32.mrb[6].mxu1 }
 0x190   :  { %v576_v59 = vpop.f32.mrb[7].mxu1 }
 0x191   :  { %v577_v60 = vadd.f32 %v576_v59, %v575_v58 }
 0x193   :  { %424 = vst [vmem:[#allocation5 + $0x58] sm:$0xff] %v577_v60 }
 0x199   :  { %v554_v61 = vpop.f32.mrb[8].mxu0 }
 0x19a   :  { %v555_v62 = vpop.f32.mrb[9].mxu0 }
 0x19b   :  { %v556_v63 = vadd.f32 %v555_v62, %v554_v61 }
 0x19d   :  { %417 = vst [vmem:[#allocation5 + $0x20] sm:$0xff] %v556_v63  ;;  %v557_v1 = vpop.f32.mrb[10].mxu0  ;;  %v578_v2 = vpop.f32.mrb[8].mxu1 }
 0x19e   :  { %v558_v3 = vpop.f32.mrb[11].mxu0  ;;  %v579_v4 = vpop.f32.mrb[9].mxu1 }
 0x19f   :  { %v559_v5 = vadd.f32 %v558_v3, %v557_v1  ;;  %v580_v6 = vadd.f32 %v579_v4, %v578_v2 }
 0x1a1   :  { %418 = vst [vmem:[#allocation5 + $0x28] sm:$0xff] %v559_v5  ;;  %425 = vst [vmem:[#allocation5 + $0x60] sm:$0xff] %v580_v6 }
 0x1a7   :  { %v581_v7 = vpop.f32.mrb[10].mxu1 }
 0x1a8   :  { %v582_v8 = vpop.f32.mrb[11].mxu1 }
 0x1a9   :  { %v583_v9 = vadd.f32 %v582_v8, %v581_v7 }
 0x1ab   :  { %426 = vst [vmem:[#allocation5 + $0x68] sm:$0xff] %v583_v9 }
 0x1b1   :  { %v560_v10 = vpop.f32.mrb[12].mxu0 }
 0x1b2   :  { %v561_v11 = vpop.f32.mrb[13].mxu0 }
 0x1b3   :  { %v562_v12 = vadd.f32 %v561_v11, %v560_v10 }
 0x1b5   :  { %419 = vst [vmem:[#allocation5 + $0x30] sm:$0xff] %v562_v12  ;;  %v584_v13 = vpop.f32.mrb[12].mxu1  ;;  %v563_v0 = vpop.f32.mrb[14].mxu0 }
 0x1b6   :  { %v585_v14 = vpop.f32.mrb[13].mxu1  ;;  %v564_v15 = vpop.f32.mrb[15].mxu0 }
 0x1b7   :  { %v586_v16 = vadd.f32 %v585_v14, %v584_v13  ;;  %v565_v17 = vadd.f32 %v564_v15, %v563_v0 }
 0x1b9   :  { %427 = vst [vmem:[#allocation5 + $0x70] sm:$0xff] %v586_v16  ;;  %420 = vst [vmem:[#allocation5 + $0x38] sm:$0xff] %v565_v17 }
 0x1bf   :  { %v587_v18 = vpop.f32.mrb[14].mxu1 }
 0x1c0   :  { %v588_v19 = vpop.f32.mrb[15].mxu1 }
 0x1c1   :  { %v589_v20 = vadd.f32 %v588_v19, %v587_v18 }
 0x1c3   :  { %428 = vst [vmem:[#allocation5 + $0x78] sm:$0xff] %v589_v20 }
 0x1c4   :  { %697 = shalt.err (!%p694_p12)
}
 0x1c5   :  { %s698_s3 = scalar_lea.hbm %s914_s2, 2048 }
 0x1c6   :  { %p699_p13 = scmp.ne.s32.totalorder %s914_s2, %s698_s3  ;;  %p702_p0 = scmp.lt.u32.totalorder %s698_s3, %s914_s2 }
 0x1c8   :  { %p704_p1 = pnand %p702_p0, %p699_p13 }
 0x1ca   :  { %707 = shalt.err (!%p704_p1)
}
 0x1cb   :  { %440 = dma.vmem_to_hbm [thread:$0]  %s435_s27, 2048, %s914_s2, [#allocation4], %s713_s19, %s713_s19, %s714_s20  }
 0x1cc   :  { %710 = dma.done.wait [#allocation4], 2048  }
 0x1cd   :  { %711 = vsyncadd [#allocation4], 4294965248 }
 0x1ce   :  { %444 = vsyncpa [#allocation3], 1 }
 0x1cf   :  { %445 = vsyncpa [#allocation4], 1 }

</bundles_post_ra>
